<compile_context>
chip_gen: v6e
topology: v6e:2x2x1
jax: 0.10.0
libtpu: 0.0.40
codegen_flags: <defaults>
</compile_context>

<pallas_src>
import math
import functools

import jax
import jax.numpy as jnp
from jax.experimental import pallas as pl
from jax.experimental.pallas import tpu as pltpu


# ---------------------------------------------------------------------------
# Kernel 1: fused per-head QKV projection + RoPE (+ softmax scale on q)
# grid = (batch, seq_block, head)
# ---------------------------------------------------------------------------
def qkv_rope_kernel(x_ref, wqkv_ref, cos_ref, sin_ref, q_ref, k_ref, v_ref, *,
                    head_dim, sm_scale):
    hd = head_dim
    half = hd // 2

    x = x_ref[0].astype(jnp.bfloat16)            # (TS, D)  bf16 MXU operand
    w = wqkv_ref[0]                              # (D, 3*hd) bf16
    qkv = jnp.dot(x, w, preferred_element_type=jnp.float32)   # (TS, 3*hd) f32

    # TODO(synk): when head_dim is not a multiple of 128 these slices cut
    # inside a 128-lane vreg tile (harmless correctness-wise, only relayouts).
    q = qkv[:, :hd]
    k = qkv[:, hd:2 * hd]
    v = qkv[:, 2 * hd:]

    cos = cos_ref[...]                           # (TS, hd) f32
    sin_s = sin_ref[...]                         # (TS, hd) f32, sign-folded

    def rot_half_nosign(t):
        # rotate_half(t) * sin == rot_half_nosign(t) * sin_signed
        if hd % 128 == 0:
            return pltpu.roll(t, shift=half, axis=-1)   # XLU slot, no MXU work
        return jnp.concatenate([t[:, half:], t[:, :half]], axis=-1)

    # RoPE in f32; fold the 1/sqrt(head_dim) scale into q here.
    q = (q * cos + rot_half_nosign(q) * sin_s) * sm_scale
    k = k * cos + rot_half_nosign(k) * sin_s

    q_ref[0, 0] = q.astype(q_ref.dtype)          # bf16 store
    k_ref[0, 0] = k.astype(k_ref.dtype)
    v_ref[0, 0] = v.astype(v_ref.dtype)


# ---------------------------------------------------------------------------
# Kernel 2: flash attention (online softmax) + fused output projection
# grid = (batch, q_block, head, kv_block); heads & kv blocks accumulate into
# the resident (1, TQ, D) output block.
# ---------------------------------------------------------------------------
def flash_attn_proj_kernel(q_ref, k_ref, v_ref, wo_ref, o_ref,
                           m_sc, l_sc, acc_sc, *, q_tile, kv_tile):
    qi = pl.program_id(1)
    h = pl.program_id(2)
    ki = pl.program_id(3)
    kv_steps = pl.num_programs(3)

    @pl.when(ki == 0)
    def _init():
        m_sc[...] = jnp.full(m_sc.shape, -jnp.inf, dtype=m_sc.dtype)
        l_sc[...] = jnp.zeros(l_sc.shape, dtype=l_sc.dtype)
        acc_sc[...] = jnp.zeros(acc_sc.shape, dtype=acc_sc.dtype)

    # Skip KV blocks that lie entirely above the causal diagonal (no matmul).
    first_col = ki * kv_tile
    last_row = qi * q_tile + (q_tile - 1)

    @pl.when(first_col <= last_row)
    def _compute():
        q = q_ref[0, 0]                          # (TQ, hd) bf16, scale folded in
        k = k_ref[0, 0]                          # (TK, hd) bf16
        v = v_ref[0, 0]                          # (TK, hd) bf16

        # q @ k^T without materializing a transposed copy of k.
        s = jax.lax.dot_general(q, k, (((1,), (1,)), ((), ())),
                                preferred_element_type=jnp.float32)  # (TQ, TK)

        row = qi * q_tile + jax.lax.broadcasted_iota(jnp.int32, s.shape, 0)
        col = ki * kv_tile + jax.lax.broadcasted_iota(jnp.int32, s.shape, 1)
        s = jnp.where(col <= row, s, -1e30)

        m_prev = m_sc[...]
        m_new = jnp.maximum(m_prev, jnp.max(s, axis=-1, keepdims=True))
        alpha = jnp.exp(m_prev - m_new)
        p = jnp.exp(s - m_new)                   # f32 softmax numerator
        l_sc[...] = alpha * l_sc[...] + jnp.sum(p, axis=-1, keepdims=True)
        acc_sc[...] = alpha * acc_sc[...] + jnp.dot(
            p.astype(jnp.bfloat16), v, preferred_element_type=jnp.float32)
        m_sc[...] = m_new

    @pl.when(ki == kv_steps - 1)
    def _finalize():
        inv_l = pl.reciprocal(l_sc[...], approx=True)         # EUP slot
        attn = (acc_sc[...] * inv_l).astype(jnp.bfloat16)      # (TQ, hd)
        contrib = jnp.dot(attn, wo_ref[0],
                          preferred_element_type=jnp.float32)  # (TQ, D)

        @pl.when(h == 0)
        def _first_head():
            o_ref[0] = contrib                   # direct write, no zero-fill

        @pl.when(h > 0)
        def _other_heads():
            o_ref[0] = o_ref[0] + contrib


# ---------------------------------------------------------------------------
# Helpers
# ---------------------------------------------------------------------------
def _tile(n, target):
    """Largest divisor of n that is <= target (n itself for tiny shapes)."""
    t = min(n, target)
    while n % t:
        t -= 1
    return t


def _vmem_limit(request_bytes):
    """Clamp a scoped-VMEM request to the device's physical capacity - headroom."""
    try:
        cap = int(getattr(pltpu.get_tpu_info(), "vmem_capacity_bytes", 64 << 20))
    except Exception:  # conservative fallback (v7x-sized)
        cap = 64 << 20
    cap = (cap * 3) // 4
    return int(min(max(request_bytes, 32 << 20), cap))


# ---------------------------------------------------------------------------
# Wrapper
# ---------------------------------------------------------------------------
def attention_forward(x, wq_t, wk_t, wv_t, wo_t, cos, sin, *, n_heads,
                      seq_tile=256, attn_tile=256):
    """x: (B, S, D) f32; w*_t: (D, D) pre-transposed to (in, out);
    cos/sin: (S, head_dim) f32. Returns (B, S, D) f32, causal attention."""
    B, S, D = x.shape
    H = n_heads
    hd = D // H
    half = hd // 2

    # ---- bf16 weight / table packing -------------------------------------
    def per_head_cols(w):                        # (D, D) -> (H, D, hd)
        return jnp.transpose(w.reshape(D, H, hd), (1, 0, 2))

    w_qkv = jnp.concatenate(
        [per_head_cols(wq_t), per_head_cols(wk_t), per_head_cols(wv_t)],
        axis=-1).astype(jnp.bfloat16)            # (H, D, 3*hd)
    wo_h = wo_t.reshape(H, hd, D).astype(jnp.bfloat16)   # (H, hd, D)

    cos = cos.astype(jnp.float32)
    sign = jnp.concatenate([-jnp.ones((half,), jnp.float32),
                            jnp.ones((half,), jnp.float32)])
    sin_signed = (sin.astype(jnp.float32) * sign[None, :])  # fold rotate_half sign

    # ---- tiling ------------------------------------------------------------
    TS = _tile(S, seq_tile)
    # TQ == TK guarantees every processed row of a non-skipped causal block has
    # at least one visible key (keeps the online softmax free of -inf corner
    # cases).  Review-suggested production tiles: 256 (v7x) / up to 512 (v6e).
    TQ = TK = _tile(S, attn_tile)
    SB, QB, KB = S // TS, S // TQ, S // TK

    f32b, bf16b = 4, 2
    req1 = 2 * (TS * D * f32b + D * 3 * hd * bf16b + 2 * TS * hd * f32b
                + 3 * TS * hd * bf16b) + 8 * TS * 3 * hd * f32b
    req2 = (2 * (TQ * hd * bf16b + 2 * TK * hd * bf16b + hd * D * bf16b
                 + TQ * D * f32b)
            + (2 * TQ + TQ * hd) * f32b + 4 * TQ * TK * f32b + 2 * TQ * D * f32b)

    # ---- kernel 1: QKV projection + RoPE -----------------------------------
    q, k, v = pl.pallas_call(
        functools.partial(qkv_rope_kernel, head_dim=hd,
                          sm_scale=1.0 / math.sqrt(hd)),
        out_shape=(
            jax.ShapeDtypeStruct((B, H, S, hd), jnp.bfloat16),
            jax.ShapeDtypeStruct((B, H, S, hd), jnp.bfloat16),
            jax.ShapeDtypeStruct((B, H, S, hd), jnp.bfloat16),
        ),
        grid_spec=pltpu.PrefetchScalarGridSpec(
            num_scalar_prefetch=0,
            grid=(B, SB, H),
            in_specs=[
                pl.BlockSpec((1, TS, D), lambda b, si, h: (b, si, 0)),        # x
                pl.BlockSpec((1, D, 3 * hd), lambda b, si, h: (h, 0, 0)),     # W_qkv
                pl.BlockSpec((TS, hd), lambda b, si, h: (si, 0)),             # cos
                pl.BlockSpec((TS, hd), lambda b, si, h: (si, 0)),             # sin*sign
            ],
            out_specs=(
                pl.BlockSpec((1, 1, TS, hd), lambda b, si, h: (b, h, si, 0)),
                pl.BlockSpec((1, 1, TS, hd), lambda b, si, h: (b, h, si, 0)),
                pl.BlockSpec((1, 1, TS, hd), lambda b, si, h: (b, h, si, 0)),
            ),
        ),
        compiler_params=pltpu.CompilerParams(
            dimension_semantics=("parallel", "parallel", "arbitrary"),
            vmem_limit_bytes=_vmem_limit(req1)),
    )(x, w_qkv, cos, sin_signed)

    # ---- kernel 2: flash attention + output projection ----------------------
    out = pl.pallas_call(
        functools.partial(flash_attn_proj_kernel, q_tile=TQ, kv_tile=TK),
        out_shape=jax.ShapeDtypeStruct((B, S, D), jnp.float32),
        grid_spec=pltpu.PrefetchScalarGridSpec(
            num_scalar_prefetch=0,
            grid=(B, QB, H, KB),
            in_specs=[
                pl.BlockSpec((1, 1, TQ, hd), lambda b, qi, h, ki: (b, h, qi, 0)),  # q
                pl.BlockSpec((1, 1, TK, hd), lambda b, qi, h, ki: (b, h, ki, 0)),  # k
                pl.BlockSpec((1, 1, TK, hd), lambda b, qi, h, ki: (b, h, ki, 0)),  # v
                pl.BlockSpec((1, hd, D), lambda b, qi, h, ki: (h, 0, 0)),          # W_o rows
            ],
            out_specs=pl.BlockSpec((1, TQ, D), lambda b, qi, h, ki: (b, qi, 0)),
            scratch_shapes=[
                pltpu.VMEM((TQ, 1), jnp.float32),    # running max
                pltpu.VMEM((TQ, 1), jnp.float32),    # running denom
                pltpu.VMEM((TQ, hd), jnp.float32),   # running numerator
            ],
        ),
        compiler_params=pltpu.CompilerParams(
            # batch + query blocks shard across TensorCores; heads and KV
            # blocks accumulate into the same output block (innermost).
            dimension_semantics=("parallel", "parallel", "arbitrary", "arbitrary"),
            vmem_limit_bytes=_vmem_limit(req2)),
    )(q, k, v, wo_h)

    return out


# ---------------------------------------------------------------------------
# Pure-JAX reference (mirrors the PyTorch forward) for validation
# ---------------------------------------------------------------------------
def attention_reference(x, wq, wk, wv, wo, cos, sin, mask, *, n_heads):
    B, S, D = x.shape
    hd = D // n_heads
    q = x @ wq
    k = x @ wk
    v = x @ wv
    q = q.reshape(B, S, n_heads, hd)
    k = k.reshape(B, S, n_heads, hd)
    v = v.reshape(B, S, n_heads, hd)
    c = cos[None, :, None, :]
    s = sin[None, :, None, :]

    def rot(t):
        t1, t2 = t[..., : hd // 2], t[..., hd // 2:]
        return jnp.concatenate([-t2, t1], axis=-1)

    q = q * c + rot(q) * s
    k = k * c + rot(k) * s
    q = jnp.transpose(q, (0, 2, 1, 3))
    k = jnp.transpose(k, (0, 2, 1, 3))
    v = jnp.transpose(v, (0, 2, 1, 3))
    scores = jnp.einsum("bhqd,bhkd->bhqk", q, k) / math.sqrt(hd)
    scores = scores + mask[None, None]
    p = jax.nn.softmax(scores.astype(jnp.float32), axis=-1)
    out = jnp.einsum("bhqk,bhkd->bhqd", p, v)
    out = jnp.transpose(out, (0, 2, 1, 3)).reshape(B, S, D)
    return out @ wo


# ---------------------------------------------------------------------------
# Main
# ---------------------------------------------------------------------------
if __name__ == "__main__":
    # Small config consistent with the module: dim=32, n_heads=4 -> head_dim=8.
    B, S, D, H = 2, 8, 32, 4
    hd = D // H

    key = jax.random.PRNGKey(0)
    kx, kq, kk, kv, ko = jax.random.split(key, 5)

    x = jax.random.normal(kx, (B, S, D), dtype=jnp.float32)

    # nn.Linear(D, D, bias=False) weights are (out, in); pass transposed (in, out).
    w_scale = 1.0 / math.sqrt(D)
    wq = (jax.random.normal(kq, (D, D), dtype=jnp.float32) * w_scale).T
    wk = (jax.random.normal(kk, (D, D), dtype=jnp.float32) * w_scale).T
    wv = (jax.random.normal(kv, (D, D), dtype=jnp.float32) * w_scale).T
    wo = (jax.random.normal(ko, (D, D), dtype=jnp.float32) * w_scale).T

    # Rotary cos/sin tables: (S, head_dim).
    inv_freq = 1.0 / (10000.0 ** (jnp.arange(0, hd, 2, dtype=jnp.float32) / hd))
    t = jnp.arange(S, dtype=jnp.float32)
    freqs = jnp.outer(t, inv_freq)                       # (S, hd/2)
    emb = jnp.concatenate([freqs, freqs], axis=-1)       # (S, hd)
    cos = jnp.cos(emb)
    sin = jnp.sin(emb)

    out = attention_forward(x, wq, wk, wv, wo, cos, sin, n_heads=H)
    out = jax.block_until_ready(out)

    # Reference applies the equivalent additive causal mask.
    causal = jnp.tril(jnp.ones((S, S), dtype=bool))
    mask = jnp.where(causal, 0.0, -1e30).astype(jnp.float32)
    ref = attention_reference(x, wq, wk, wv, wo, cos, sin, mask, n_heads=H)

    assert out.shape == (B, S, D)
    max_err = float(jnp.max(jnp.abs(out - ref)))
    # bf16 MXU operands (f32 accumulation) -> ~1e-2-level precision expected.
    assert jnp.allclose(out, ref, atol=3e-2, rtol=3e-2), (
        f"mismatch vs reference, max abs err {max_err}")

    print("KERNEL_OK")
</pallas_src>

<mosaic_0001>
module attributes {stable_mosaic.version = 11 : i64} {
  func.func @qkv_rope_kernel(%arg0: i32, %arg1: i32, %arg2: i32, %arg3: memref<1x8x32xf32, #tpu.memory_space<vmem>>, %arg4: memref<1x32x24xbf16, #tpu.memory_space<vmem>>, %arg5: memref<8x8xf32, #tpu.memory_space<vmem>>, %arg6: memref<8x8xf32, #tpu.memory_space<vmem>>, %arg7: memref<1x1x8x8xbf16, #tpu.memory_space<vmem>>, %arg8: memref<1x1x8x8xbf16, #tpu.memory_space<vmem>>, %arg9: memref<1x1x8x8xbf16, #tpu.memory_space<vmem>>) attributes {dimension_semantics = [#tpu.dimension_semantics<parallel>, #tpu.dimension_semantics<parallel>, #tpu.dimension_semantics<arbitrary>], iteration_bounds = array<i64: 2, 1, 4>, scalar_prefetch = 0 : i64, scratch_operands = 0 : i64, tpu.core_type = #tpu.core_type<tc>, window_params = [{transform_indices = @transform_0, window_bounds = array<i64: 1, 8, 32>}, {transform_indices = @transform_1, window_bounds = array<i64: 1, 32, 24>}, {transform_indices = @transform_2, window_bounds = array<i64: 8, 8>}, {transform_indices = @transform_3, window_bounds = array<i64: 8, 8>}, {transform_indices = @transform_4, window_bounds = array<i64: 1, 1, 8, 8>}, {transform_indices = @transform_5, window_bounds = array<i64: 1, 1, 8, 8>}, {transform_indices = @transform_6, window_bounds = array<i64: 1, 1, 8, 8>}]} {
    %c0 = arith.constant 0 : index
    %c0_0 = arith.constant 0 : index
    %c0_1 = arith.constant 0 : index
    %0 = vector.load %arg3[%c0, %c0_0, %c0_1] : memref<1x8x32xf32, #tpu.memory_space<vmem>>, vector<1x8x32xf32>
    %1 = vector.shape_cast %0 : vector<1x8x32xf32> to vector<8x32xf32>
    %2 = arith.truncf %1 : vector<8x32xf32> to vector<8x32xbf16>
    %c0_2 = arith.constant 0 : index
    %c0_3 = arith.constant 0 : index
    %c0_4 = arith.constant 0 : index
    %3 = vector.load %arg4[%c0_2, %c0_3, %c0_4] : memref<1x32x24xbf16, #tpu.memory_space<vmem>>, vector<1x32x24xbf16>
    %4 = vector.shape_cast %3 : vector<1x32x24xbf16> to vector<32x24xbf16>
    %cst = arith.constant dense<0.000000e+00> : vector<8x24xf32>
    %5 = tpu.matmul %2, %4, %cst {dimension_numbers = #tpu.dot_dimension_numbers<[1], [0], [0], [1], [0, 0, 1, 1], [], []>} : vector<8x32xbf16>, vector<32x24xbf16>, vector<8x24xf32> -> vector<8x24xf32>
    %6 = vector.extract_strided_slice %5 {offsets = [0, 0], sizes = [8, 8], strides = [1, 1]} : vector<8x24xf32> to vector<8x8xf32>
    %7 = vector.extract_strided_slice %5 {offsets = [0, 8], sizes = [8, 8], strides = [1, 1]} : vector<8x24xf32> to vector<8x8xf32>
    %8 = vector.extract_strided_slice %5 {offsets = [0, 16], sizes = [8, 8], strides = [1, 1]} : vector<8x24xf32> to vector<8x8xf32>
    %c0_5 = arith.constant 0 : index
    %c0_6 = arith.constant 0 : index
    %9 = vector.load %arg5[%c0_5, %c0_6] : memref<8x8xf32, #tpu.memory_space<vmem>>, vector<8x8xf32>
    %c0_7 = arith.constant 0 : index
    %c0_8 = arith.constant 0 : index
    %10 = vector.load %arg6[%c0_7, %c0_8] : memref<8x8xf32, #tpu.memory_space<vmem>>, vector<8x8xf32>
    %11 = arith.mulf %6, %9 : vector<8x8xf32>
    %12 = vector.extract_strided_slice %6 {offsets = [0, 4], sizes = [8, 4], strides = [1, 1]} : vector<8x8xf32> to vector<8x4xf32>
    %13 = vector.extract_strided_slice %6 {offsets = [0, 0], sizes = [8, 4], strides = [1, 1]} : vector<8x8xf32> to vector<8x4xf32>
    %14 = tpu.concatenate %12, %13 in 1 : vector<8x4xf32>, vector<8x4xf32> -> vector<8x8xf32>
    %15 = arith.mulf %14, %10 : vector<8x8xf32>
    %16 = arith.addf %11, %15 : vector<8x8xf32>
    %cst_9 = arith.constant 0.353553385 : f32
    %17 = vector.broadcast %cst_9 : f32 to vector<8x8xf32>
    %18 = arith.mulf %16, %17 : vector<8x8xf32>
    %19 = arith.mulf %7, %9 : vector<8x8xf32>
    %20 = vector.extract_strided_slice %7 {offsets = [0, 4], sizes = [8, 4], strides = [1, 1]} : vector<8x8xf32> to vector<8x4xf32>
    %21 = vector.extract_strided_slice %7 {offsets = [0, 0], sizes = [8, 4], strides = [1, 1]} : vector<8x8xf32> to vector<8x4xf32>
    %22 = tpu.concatenate %20, %21 in 1 : vector<8x4xf32>, vector<8x4xf32> -> vector<8x8xf32>
    %23 = arith.mulf %22, %10 : vector<8x8xf32>
    %24 = arith.addf %19, %23 : vector<8x8xf32>
    %25 = arith.truncf %18 : vector<8x8xf32> to vector<8x8xbf16>
    %c0_10 = arith.constant 0 : index
    %c0_11 = arith.constant 0 : index
    %c0_12 = arith.constant 0 : index
    %c0_13 = arith.constant 0 : index
    %26 = vector.load %arg7[%c0_10, %c0_11, %c0_12, %c0_13] : memref<1x1x8x8xbf16, #tpu.memory_space<vmem>>, vector<1x1x8x8xbf16>
    %27 = vector.shape_cast %26 : vector<1x1x8x8xbf16> to vector<8x8xbf16>
    %28 = vector.shape_cast %25 : vector<8x8xbf16> to vector<1x1x8x8xbf16>
    tpu.vector_store %arg7[%c0_10, %c0_11, %c0_12, %c0_13], %28 {strides = array<i32>} : memref<1x1x8x8xbf16, #tpu.memory_space<vmem>>, vector<1x1x8x8xbf16>,
    %29 = arith.truncf %24 : vector<8x8xf32> to vector<8x8xbf16>
    %c0_14 = arith.constant 0 : index
    %c0_15 = arith.constant 0 : index
    %c0_16 = arith.constant 0 : index
    %c0_17 = arith.constant 0 : index
    %30 = vector.load %arg8[%c0_14, %c0_15, %c0_16, %c0_17] : memref<1x1x8x8xbf16, #tpu.memory_space<vmem>>, vector<1x1x8x8xbf16>
    %31 = vector.shape_cast %30 : vector<1x1x8x8xbf16> to vector<8x8xbf16>
    %32 = vector.shape_cast %29 : vector<8x8xbf16> to vector<1x1x8x8xbf16>
    tpu.vector_store %arg8[%c0_14, %c0_15, %c0_16, %c0_17], %32 {strides = array<i32>} : memref<1x1x8x8xbf16, #tpu.memory_space<vmem>>, vector<1x1x8x8xbf16>,
    %33 = arith.truncf %8 : vector<8x8xf32> to vector<8x8xbf16>
    %c0_18 = arith.constant 0 : index
    %c0_19 = arith.constant 0 : index
    %c0_20 = arith.constant 0 : index
    %c0_21 = arith.constant 0 : index
    %34 = vector.load %arg9[%c0_18, %c0_19, %c0_20, %c0_21] : memref<1x1x8x8xbf16, #tpu.memory_space<vmem>>, vector<1x1x8x8xbf16>
    %35 = vector.shape_cast %34 : vector<1x1x8x8xbf16> to vector<8x8xbf16>
    %36 = vector.shape_cast %33 : vector<8x8xbf16> to vector<1x1x8x8xbf16>
    tpu.vector_store %arg9[%c0_18, %c0_19, %c0_20, %c0_21], %36 {strides = array<i32>} : memref<1x1x8x8xbf16, #tpu.memory_space<vmem>>, vector<1x1x8x8xbf16>,
    return
  }
  func.func @transform_0(%arg0: i32, %arg1: i32, %arg2: i32) -> (i32, i32, i32) {
    %c0_i32 = arith.constant 0 : i32
    %c0_i32_0 = arith.constant 0 : i32
    return %arg0, %arg1, %c0_i32 : i32, i32, i32
  }
  func.func @transform_1(%arg0: i32, %arg1: i32, %arg2: i32) -> (i32, i32, i32) {
    %c0_i32 = arith.constant 0 : i32
    %c0_i32_0 = arith.constant 0 : i32
    %c0_i32_1 = arith.constant 0 : i32
    return %arg2, %c0_i32, %c0_i32_0 : i32, i32, i32
  }
  func.func @transform_2(%arg0: i32, %arg1: i32, %arg2: i32) -> (i32, i32) {
    %c0_i32 = arith.constant 0 : i32
    %c0_i32_0 = arith.constant 0 : i32
    return %arg1, %c0_i32 : i32, i32
  }
  func.func @transform_3(%arg0: i32, %arg1: i32, %arg2: i32) -> (i32, i32) {
    %c0_i32 = arith.constant 0 : i32
    %c0_i32_0 = arith.constant 0 : i32
    return %arg1, %c0_i32 : i32, i32
  }
  func.func @transform_4(%arg0: i32, %arg1: i32, %arg2: i32) -> (i32, i32, i32, i32) {
    %c0_i32 = arith.constant 0 : i32
    %c0_i32_0 = arith.constant 0 : i32
    return %arg0, %arg2, %arg1, %c0_i32 : i32, i32, i32, i32
  }
  func.func @transform_5(%arg0: i32, %arg1: i32, %arg2: i32) -> (i32, i32, i32, i32) {
    %c0_i32 = arith.constant 0 : i32
    %c0_i32_0 = arith.constant 0 : i32
    return %arg0, %arg2, %arg1, %c0_i32 : i32, i32, i32, i32
  }
  func.func @transform_6(%arg0: i32, %arg1: i32, %arg2: i32) -> (i32, i32, i32, i32) {
    %c0_i32 = arith.constant 0 : i32
    %c0_i32_0 = arith.constant 0 : i32
    return %arg0, %arg2, %arg1, %c0_i32 : i32, i32, i32, i32
  }
}

</mosaic_0001>

<bundles_post_ra>
// kernel: tpu_custom_call.1
= control target key start
LH: loop header
LB: loop body
LE: loop exit
PB: predicated region body
PF: predicated region fallthrough
CT: control target
= control target key end

     0   :  { %s1286_s0 = inlined_call_operand.vmem [shape: f32[2,8,32], index: 0, kind: input, shape index: {}]   ;;  %s1287_s1 = inlined_call_operand.vmem [shape: bf16[4,32,24], index: 1, kind: input, shape index: {}]   ;;  %s1288_s2 = inlined_call_operand.vmem [shape: f32[8,8], index: 2, kind: input, shape index: {}]   ;;  %s1289_s3 = inlined_call_operand.vmem [shape: f32[8,8], index: 3, kind: input, shape index: {}]   ;;  %s1290_s4 = inlined_call_operand.hbm [shape: bf16[2,4,8,8], index: 4, kind: output, shape index: {0}]   ;;  %s1291_s5 = inlined_call_operand.hbm [shape: bf16[2,4,8,8], index: 5, kind: output, shape index: {1}]   ;;  %s1292_s6 = inlined_call_operand.hbm [shape: bf16[2,4,8,8], index: 6, kind: output, shape index: {2}]  }
   0x1   :  { %1297 = sst [smem:[#allocation10_spill]] %s1286_s0 }
   0x2   :  { %12 = vsyncpa [#allocation3], 0 }
   0x3   :  { %14 = vsyncpa [#allocation3 + $0x1], 0 }
   0x4   :  { %15 = vsyncpa [#allocation5], 0 }
   0x5   :  { %17 = vsyncpa [#allocation5 + $0x1], 0  ;;  %s1050_s21 = smov 0   ;;  %s1052_s22 = smov 0  }
   0x6   :  { %s1054_s23 = smov 0   ;;  %s1056_s24 = smov 0  }
   0x7   :  { %s1058_s25 = smov 0   ;;  %s1060_s26 = smov 0  }
   0x8   :  { %s1062_s27 = smov 0   ;;  %s1064_s28 = smov 0  }
   0x9 LB: > { %s1294_s29 = sadd.s32 4294967295, %s1002_s28   ;;  %s1293_s30 = sadd.s32 4294967294, %s1002_s28   ;;  %s1002_s28 = sphi %s1064_s28, %s23_s28   ;;  %s998_s27 = sphi %s1062_s27, %s1312_s27   ;;  %s994_s26 = sphi %s1060_s26, %s1311_s26   ;;  %s990_s25 = sphi %s1058_s25, %s1310_s25   ;;  %s986_s24 = sphi %s1056_s24, %s1309_s24   ;;  %s982_s23 = sphi %s1054_s23, %s1308_s23   ;;  %s978_s22 = sphi %s1052_s22, %s1307_s22   ;;  %s974_s21 = sphi %s1050_s21, %s1306_s21  }
   0xa   : > { %s35_s7 = sadd.s32 1, %s994_s26  ;;  %s42_s8 = sadd.s32 1, %s998_s27 }
   0xb   : > { %p36_p0 = scmp.ge.s32.totalorder %s35_s7, 4  ;;  %p169_p1 = scmp.ne.s32.totalorder %s982_s23, %s978_s22 }
   0xc   : > { %p170_p2 = scmp.eq.s32.totalorder %s1294_s29, 7  ;;  %p175_p5 = scmp.ne.s32.totalorder %s978_s22, %s974_s21 }
   0xd   : > { %s1314_s7 = smov (%p36_p0, %s35_s7), 0  ;;  %s1316_s8 = smov (!%p36_p0, %s42_s8), %s998_s27 }
   0xe   : > { %s153_s9 = ssub.s32 %s994_s26, %s1314_s7  ;;  %p1103_p3 = por %p170_p2, %p169_p1 }
   0xf   : > { %p44_p4 = scmp.ge.s32.totalorder %s1316_s8, 2  ;;  %p176_p6 = scmp.eq.s32.totalorder %s1293_s30, 7 }
  0x10   : > { %p726_p7 = scmp.ge.s32.totalorder %s1002_s28, 1  ;;  %p286_p9 = scmp.lt.s32.totalorder %s1002_s28, 9 }
  0x11   : > { %s1318_s8 = smov (%p44_p4, %s1316_s8), 0  ;;  %p1114_p8 = por %p176_p6, %p175_p5 }
  0x12   : > { %1299 = sst [smem:[#allocation9_spill]] %s1318_s8  ;;  %s152_s12 = ssub.s32 %s998_s27, %s1318_s8 }
  0x13   : > { %s159_s13 = sadd.s32 1, %s982_s23  ;;  %s154_s14 = sor.u32 %s153_s9, %s152_s12 }
  0x14   : > { %p287_p10 = pnand %p726_p7, %p286_p9  ;;  %p157_p11 = scmp.eq.s32.totalorder %s154_s14, 0 }
  0x15   : > { %p348_p12 = scmp.lt.s32.totalorder (!%p287_p10), %s986_s24, 3  ;;  %p341_p13 = scmp.lt.s32.totalorder (!%p287_p10), %s990_s25, 1 }
  0x16   : > { %s1123_s15 = scalar_select %p157_p11, %s982_s23, %s159_s13  }
  0x17   : > { %290 = sbr.rel (%p287_p10) target bundleno = 623 (0x26f), region = 36  ;;  %s1006_s19 = smov (!%p287_p10), 8  }
  0x18   : > { %s1301_s0 = sld [smem:[#allocation10_spill]] (!%p287_p10)  ;;  %s1007_s17 = smov (!%p287_p10), 124  }
  0x19   : > { %s1009_s29 = smov (!%p287_p10), 4  }
  0x1c   : > { %v424_v0 = vld [vmem:[%s1288_s2] sm:$0xff]  ;;  %v1004_v1 = vmov 0.0   ;;  %vm1005_vm0 = vmmov 0   ;;  %s349_s18 = scalar_select %p348_p12, %s986_s24, 3  ;;  %vm380_vm1 = vcmask 261120   ;;  %vm434_vm2 = vcmask 31744  }
  0x1d   : > { %755 = vmatprep.subr.bf16.mxu0 %v1004_v1  ;;  %759 = vmatprep.mubr.msk.bf16.mxu0 %vm1005_vm0, %v1004_v1  ;;  %s342_s20 = scalar_select %p341_p13, %s990_s25, 1  ;;  %v425_v12 = vld [vmem:[%s1289_s3] sm:$0xff]  ;;  %vm455_vm3 = vcmask 60416  }
  0x1e   : > { %440 = vrot.lane.b32.xlu1 %v424_v0, %s1006_s19  ;;  %s749_s9 = sshll.u32 %s349_s18, 4  ;;  %s1008_s18 = smov 116  }
  0x1f   : > { %s352_s14 = scalar_lea.vmem %s1287_s1, %s749_s9  ;;  %s730_s30 = sshll.u32 %s342_s20, 3 }
  0x20   : > { %v852_v2 = vld [vmem:[%s352_s14 + $0x8] sm:$0xff]   ;;  %s347_s16 = scalar_lea.vmem %s1301_s0, %s730_s30  ;;  %v853_v3 = vld [vmem:[%s352_s14] sm:$0xff]   ;;  %s1010_s30 = smov 112  }
  0x21   : > { %756 = vmatpush3.bf16.msra.mxu0 %v852_v2  ;;  %v362_v4 = vld [vmem:[%s347_s16] sm:$0xff]  ;;  %s324_s9 = sand.u32 1, %s978_s22   ;;  %s741_s16 = sshll.u32 %s990_s25, 2 }
  0x22   : > { %757 = vmatprep.subr.bf16.mxu0 %v1004_v1  ;;  %v363_v5 = vpack.c.bf16 %v362_v4, %v362_v4  ;;  %s1150_s12 = sshll.u32 %s324_s9, 2  ;;  %s474_s20 = scalar_lea.sflag [#allocation3], %s324_s9 }
  0x23   : > { %s1296_s13 = scalar_lea.vmem [#allocation6], %s1150_s12  ;;  %s326_s14 = scalar_lea.vmem [#allocation2], %s1150_s12 }
  0x24   : > { %s500_s8 = sshll.u32 %s326_s14, 4  ;;  %s1011_s0 = smov [#allocation2]   ;;  %s501_s8 = int_to_ptr.vmem [resolvable:$true] %s500_s8 }
  0x25   : > { %758 = vmatpush3.bf16.msra.mxu0 %v853_v3  ;;  %s858_s25 = sshll.u32 %s1011_s0, 4  ;;  %s859_s25 = int_to_ptr.vmem [resolvable:$false] %s858_s25 }
  0x26   : > { %p861_p4 = scmp.lt.s32.totalorder %s501_s8, %s859_s25 }
  0x28   : > { %760 = vmatmul.mubr.msk.bf16.vlgmr.msra.gmra.mxu0 %vm380_vm1, %v363_v5 }
  0x90   : > { %v441_v24 = vpop.permute.xlu1 %440 }
  0xe8   : > { %v1139_v6 = vpop.f32.mrf.mxu0 }
  0xe9   : > { %428 = vrot.lane.b32.xlu0 %v1139_v6, %s1007_s17  ;;  %v751_v10 = vpack.c.bf16 %v1139_v6, %v1139_v6  ;;  %v426_v18 = vmul.f32 %v424_v0, %v1139_v6 }
  0xea   : > { %v761_v7 = vpop.f32.mrf.mxu0 }
  0xec   : > { %v421_v8 = vpop.f32.mrf.mxu0 }
  0xed   : > { %444 = vrot.lane.b32.xlu0 %v1139_v6, %s1008_s18 }
  0xee   : > { %v762_v9 = vpop.f32.mrf.mxu0 }
  0xf1   : > { %431 = vrot.lane.b32.xlu0 %v1139_v6, %s1009_s29 }
  0xf5   : > { %469 = vrot.lane.b32.xlu0 %v751_v10, %s1010_s30 }
 0x15b   : > { %v429_v11 = vpop.permute.xlu0 %428 }
 0x15f   : > { %v445_v13 = vpop.permute.xlu0 %444 }
 0x160   : > { %v447_v14 = vsel %vm434_vm2, %v445_v13, %v429_v11 }
 0x161   : > { %v448_v15 = vmul.f32 %v447_v14, %v425_v12 }
 0x163   : > { %450 = vrot.lane.b32.xlu1 %v448_v15, %s1006_s19  ;;  %v432_v16 = vpop.permute.xlu0 %431  ;;  %s496_s19 = sadd.s32 %s986_s24, %s741_s16  ;;  %s860_s24 = scalar_lea.vmem %s859_s25, 128 }
 0x164   : > { %v435_v17 = vsel %vm434_vm2, %v429_v11, %v432_v16  ;;  %s1162_s17 = sshll.u32 %s496_s19, 6 }
 0x165   : > { %v436_v19 = vmul.f32 %v435_v17, %v425_v12  ;;  %s1168_s30 = scalar_lea.hbm %s1290_s4, %s1162_s17 }
 0x167   : > { %v437_v20 = vadd.f32 %v436_v19, %v426_v18  ;;  %v470_v21 = vpop.permute.xlu0 %469 }
 0x168   : > { %472 = vst.msk [vmem:[%s1296_s13] sm:$0xf] %vm455_vm3, %v470_v21  ;;  %s854_s13 = scalar_lea.vmem %s501_s8, 64 }
 0x169   : > { %v438_v22 = vmul.f32 0.35355338, %v437_v20  ;;  %p855_p0 = scmp.ne.s32.totalorder %s501_s8, %s854_s13  ;;  %p862_p5 = scmp.lt.s32.totalorder %s860_s24, %s854_s13 }
 0x16b   : > { %v454_v23 = vpack.c.bf16 %v438_v22, %v438_v22  ;;  %p856_p1 = pnand %p855_p0, %p1103_p3  ;;  %p863_p6 = por %p862_p5, %p861_p4 }
 0x16d   : > { %456 = vst.msk [vmem:[%s326_s14] sm:$0xf] %vm455_vm3, %v454_v23  ;;  %p857_p2 = pneg %p856_p1 }
 0x16f   : > { %p864_p7 = pnand %p863_p6, %p857_p2 }
 0x171   : > { %867 = shalt.err (!%p864_p7)
}
 0x172   : > { %s868_s14 = scalar_lea.hbm %s1168_s30, 64  ;;  %s872_s0 = scalar_lea.hbm %s1290_s4, 512 }
 0x173   : > { %p869_p9 = scmp.ne.s32.totalorder %s1168_s30, %s868_s14  ;;  %p873_p12 = scmp.lt.s32.totalorder %s1168_s30, %s1290_s4 }
 0x174   : > { %p874_p13 = scmp.lt.s32.totalorder %s872_s0, %s868_s14 }
 0x175   : > { %p870_p10 = pnand %p869_p9, %p1103_p3 }
 0x176   : > { %p875_p0 = por %p874_p13, %p873_p12 }
 0x177   : > { %p871_p11 = pneg %p870_p10 }
 0x179   : > { %p876_p1 = pnand %p875_p0, %p871_p11 }
 0x17b   : > { %879 = shalt.err (!%p876_p1)
}
 0x17c   : > { %763 = dma.vmem_to_hbm [thread:$0]  (%p1103_p3), %s501_s8, 64, %s1168_s30, %s474_s20   ;;  %v443_v25 = vmul.f32 %v441_v24, %v1139_v6 }
 0x17d   : > { %s1012_s13 = smov 120   ;;  %s1302_s29 = sadd.s32 4294967295, %s1002_s28  }
 0x17e   : > { %s1189_s25 = sand.u32 1, %s1302_s29   ;;  %s333_s24 = scalar_lea.vmem [#allocation4], %s1150_s12 }
 0x17f   : > { %s516_s14 = sshll.u32 %s333_s24, 4  ;;  %s1303_s9 = scalar_lea.vmem [#allocation6], %s1150_s12  ;;  %s1200_s14 = int_to_ptr.vmem [resolvable:$true] %s516_s14 }
 0x180   : > { %s532_s16 = sshll.u32 %s1303_s9, 4  ;;  %s1198_s30 = scalar_lea.hbm %s1291_s5, %s1162_s17  ;;  %s1202_s16 = int_to_ptr.vmem [resolvable:$true] %s532_s16 }
 0x181   : > { %s1208_s18 = scalar_lea.hbm %s1292_s6, %s1162_s17  ;;  %s479_s12 = scalar_lea.sflag [#allocation5], %s1189_s25 }
 0x182   : > { %s1013_s29 = smov [#allocation4]  }
 0x183   : > { %s884_s9 = sshll.u32 %s1013_s29, 4  ;;  %s885_s9 = int_to_ptr.vmem [resolvable:$false] %s884_s9 }
 0x184   : > { %s886_s0 = scalar_lea.vmem %s885_s9, 128  ;;  %p887_p6 = scmp.lt.s32.totalorder %s1200_s14, %s885_s9 }
 0x1d5   : > { %v451_v26 = vpop.permute.xlu1 %450 }
 0x1d6   : > { %v453_v27 = vadd.f32 %v451_v26, %v443_v25 }
 0x1d8   : > { %v750_v28 = vpack.c.bf16 %v453_v27, %v453_v27 }
 0x1da   : > { %461 = vrot.lane.b32.xlu1 %v750_v28, %s1012_s13  ;;  %s880_s13 = scalar_lea.vmem %s1200_s14, 64 }
 0x1db   : > { %p881_p2 = scmp.ne.s32.totalorder %s1200_s14, %s880_s13  ;;  %p888_p7 = scmp.lt.s32.totalorder %s886_s0, %s880_s13 }
 0x1dd   : > { %p882_p4 = pnand %p881_p2, %p1103_p3  ;;  %p889_p9 = por %p888_p7, %p887_p6 }
 0x1df   : > { %p883_p5 = pneg %p882_p4 }
 0x1e1   : > { %p890_p10 = pnand %p889_p9, %p883_p5 }
 0x24c   : > { %v462_v29 = vpop.permute.xlu1 %461 }
 0x24d   : > { %464 = vst.msk [vmem:[%s333_s24] sm:$0xf] %vm455_vm3, %v462_v29 }
 0x24e   : > { %893 = shalt.err (!%p890_p10)
}
 0x24f   : > { %s894_s17 = scalar_lea.hbm %s1198_s30, 64  ;;  %s898_s8 = scalar_lea.hbm %s1291_s5, 512 }
 0x250   : > { %p895_p11 = scmp.ne.s32.totalorder %s1198_s30, %s894_s17  ;;  %p899_p0 = scmp.lt.s32.totalorder %s1198_s30, %s1291_s5 }
 0x251   : > { %p900_p1 = scmp.lt.s32.totalorder %s898_s8, %s894_s17 }
 0x252   : > { %p896_p12 = pnand %p895_p11, %p1103_p3 }
 0x253   : > { %p901_p2 = por %p900_p1, %p899_p0 }
 0x254   : > { %p897_p13 = pneg %p896_p12 }
 0x256   : > { %p902_p4 = pnand %p901_p2, %p897_p13 }
 0x258   : > { %905 = shalt.err (!%p902_p4)
}
 0x259   : > { %764 = dma.vmem_to_hbm [thread:$0]  (%p1103_p3), %s1200_s14, 64, %s1198_s30, %s479_s12  }
 0x25a   : > { %s906_s13 = scalar_lea.vmem %s1202_s16, 64  ;;  %s1014_s9 = smov [#allocation6]  }
 0x25b   : > { %p907_p5 = scmp.ne.s32.totalorder %s1202_s16, %s906_s13  ;;  %s910_s0 = sshll.u32 %s1014_s9, 4  ;;  %s911_s0 = int_to_ptr.vmem [resolvable:$false] %s910_s0 }
 0x25c   : > { %s912_s17 = scalar_lea.vmem %s911_s0, 128  ;;  %p913_p9 = scmp.lt.s32.totalorder %s1202_s16, %s911_s0 }
 0x25d   : > { %p908_p6 = pnand %p907_p5, %p1103_p3  ;;  %p914_p10 = scmp.lt.s32.totalorder %s912_s17, %s906_s13 }
 0x25f   : > { %p909_p7 = pneg %p908_p6  ;;  %p915_p11 = por %p914_p10, %p913_p9 }
 0x261   : > { %p916_p12 = pnand %p915_p11, %p909_p7 }
 0x263   : > { %919 = shalt.err (!%p916_p12)
}
 0x264   : > { %s920_s24 = scalar_lea.hbm %s1208_s18, 64  ;;  %s924_s19 = scalar_lea.hbm %s1292_s6, 512 }
 0x265   : > { %p921_p13 = scmp.ne.s32.totalorder %s1208_s18, %s920_s24  ;;  %p925_p2 = scmp.lt.s32.totalorder %s1208_s18, %s1292_s6 }
 0x266   : > { %p926_p4 = scmp.lt.s32.totalorder %s924_s19, %s920_s24 }
 0x267   : > { %p922_p0 = pnand %p921_p13, %p1103_p3 }
 0x268   : > { %p927_p5 = por %p926_p4, %p925_p2 }
 0x269   : > { %p923_p1 = pneg %p922_p0 }
 0x26b   : > { %p928_p6 = pnand %p927_p5, %p923_p1 }
 0x26d   : > { %931 = shalt.err (!%p928_p6)
}
 0x26e   : > { %765 = dma.vmem_to_hbm [thread:$0]  (%p1103_p3), %s1202_s16, 64, %s1208_s18, %s479_s12  }
 0x26f PF: > { %p779_p7 = scmp.ge.s32.totalorder %s1002_s28, 2  ;;  %s544_s29 = sand.u32 1, %s974_s21  }
 0x270   : > { %s545_s13 = scalar_lea.sflag [#allocation3], %s544_s29 }
 0x271   : > { %p770_p9 = pnand %p779_p7, %p1114_p8 }
 0x273   : > { %p771_p10 = pneg %p770_p9 }
 0x275   : > { %965 = dma.done.wait (%p771_p10), %s545_s13, 64  }
 0x276   : > { %967 = vsyncadd (%p771_p10), %s545_s13, 4294967232  ;;  %s1304_s9 = sadd.s32 4294967294, %s1002_s28  }
 0x277   : > { %s553_s10 = sand.u32 1, %s1304_s9  }
 0x278   : > { %s554_s0 = scalar_lea.sflag [#allocation5], %s553_s10 }
 0x279   : > { %969 = dma.done.wait (%p771_p10), %s554_s0, 128  }
 0x27a   : > { %971 = vsyncadd (%p771_p10), %s554_s0, 4294967168  ;;  %s23_s28 = sadd.s32 1, %s1002_s28   ;;  %s1305_s11 = sld [smem:[#allocation9_spill]] }
 0x27b   : > { %p20_p3 = scmp.ge.s32.totalorder %s23_s28, 10   ;;  %s1306_s21 = smov %s978_s22 }
 0x27c   : > { %s1307_s22 = smov %s982_s23  ;;  %s1308_s23 = smov %s1123_s15 }
 0x27d   : > { %s1309_s24 = smov %s994_s26  ;;  %s1310_s25 = smov %s998_s27 }
 0x27e   : > { %s1311_s26 = smov %s1314_s7  ;;  %22 = sbr.rel (!%p20_p3) target bundleno = 9 (0x9), region = 112 }
 0x280   : > { %s1312_s27 = smov %s1305_s11 }
 0x283   :  { %568 = vsyncpa [#allocation3], 1 }
 0x284   :  { %570 = vsyncpa [#allocation3 + $0x1], 1 }
 0x285   :  { %571 = vsyncpa [#allocation5], 1 }
 0x286   :  { %573 = vsyncpa [#allocation5 + $0x1], 1 }

</bundles_post_ra>
